<compile_context>
chip_gen: v5e
topology: v5e:2x2
jax: 0.10.0
libtpu: 0.0.40
codegen_flags: <defaults>
</compile_context>

<pallas_src>
import jax
import jax.numpy as jnp
from jax.experimental import pallas as pl
from jax.experimental.pallas import tpu as pltpu


def _cdiv(a, b):
    return -(-a // b)


def _round_up(x, m):
    return _cdiv(x, m) * m


def write_unit_kernel(info_ref, mem_ref, wt_ref, b_ref, out_ref):
    # info_ref: [TB, d], mem_ref: [TB, d], wt_ref: [2d, TN], b_ref: [1, TN]
    d = info_ref.shape[1]
    # Concat-free split GEMM: two MXU pushes into one f32 accumulator.
    acc = jnp.dot(info_ref[...], wt_ref[:d, :],
                  preferred_element_type=jnp.float32)
    acc = acc + jnp.dot(mem_ref[...], wt_ref[d:, :],
                        preferred_element_type=jnp.float32)
    # Bias added exactly once, in f32; cast on store.
    out_ref[...] = (acc + b_ref[...].astype(jnp.float32)).astype(out_ref.dtype)


def write_unit_forward(information, memory, wt, bias, *, tb=None, tn=None):
    """Forward pass of WriteUnit.

    information: [B, d], memory: [B, d]
    wt:   pre-transposed linear weight, shape [2d, d]  (== torch W.T)
    bias: [d]
    Returns [B, d] in information.dtype.
    """
    B, d = information.shape
    assert memory.shape == (B, d)
    assert wt.shape == (2 * d, d)
    assert bias.shape == (d,)
    assert information.dtype == memory.dtype == wt.dtype, (
        "activations and weight must share a dtype (f32 or bf16)")
    # Keeps wt_ref[:d]/wt_ref[d:] free (8,128)-aligned Ref views.
    assert d % 8 == 0, "d must be a multiple of 8"

    a_bytes = information.dtype.itemsize
    w_bytes = wt.dtype.itemsize
    sub = 16 if a_bytes == 2 else 8          # bf16 packs 16 sublanes per vreg

    # ---- weight residency decision (per-buffer cap for the full weight) ----
    WT_RESIDENT_BYTES = 8 << 20
    weight_resident = (2 * d * d * w_bytes) <= WT_RESIDENT_BYTES

    # ---- batch tile ---------------------------------------------------------
    if tb is None:
        # Keep each activation tile around <= 2 MiB; sublane-aligned; <= 512.
        tb_cap = max(sub, min(512, (2 << 20) // max(1, d * a_bytes)))
        tb_cap = max(sub, (tb_cap // sub) * sub)
        if B <= tb_cap:
            if B >= 128:
                # Guarantee >= 2 parallel batch tiles so v7x's 2 TCs both work.
                tb = min(tb_cap, _round_up(_cdiv(B, 2), sub))
            else:
                tb = B
        else:
            tb = tb_cap

    # ---- feature tile -------------------------------------------------------
    if tn is None:
        if weight_resident:
            tn = d
        else:
            # Column-tile the weight; per-buffer wt tile <= ~8 MiB, 128-aligned.
            tn_budget = max(128, WT_RESIDENT_BYTES // (2 * d * w_bytes))
            tn = d
            for cand in (512, 256, 128):
                if cand <= tn_budget and d % cand == 0:
                    tn = cand
                    break

    b2 = bias.reshape(1, d)                  # keep 2D for TPU layout

    if tn == d:
        # Weight (and bias) fully resident: constant block index across the
        # single batch grid axis -> DMA'd once, never re-fetched.
        grid = (_cdiv(B, tb),)
        in_specs = [
            pl.BlockSpec((tb, d), lambda i: (i, 0)),          # info rows
            pl.BlockSpec((tb, d), lambda i: (i, 0)),          # mem rows
            pl.BlockSpec((2 * d, d), lambda i: (0, 0)),       # full weight
            pl.BlockSpec((1, d), lambda i: (0, 0)),           # full bias
        ]
        out_specs = pl.BlockSpec((tb, d), lambda i: (i, 0))
        dims = ("parallel",)
    else:
        # Large d: weight column-tiled.  Feature axis OUTER, batch INNER so the
        # wt/bias block index is constant across consecutive (inner) steps and
        # Pallas skips the re-DMA.
        grid = (_cdiv(d, tn), _cdiv(B, tb))
        in_specs = [
            pl.BlockSpec((tb, d), lambda j, i: (i, 0)),       # info rows
            pl.BlockSpec((tb, d), lambda j, i: (i, 0)),       # mem rows
            pl.BlockSpec((2 * d, tn), lambda j, i: (0, j)),   # Wt columns
            pl.BlockSpec((1, tn), lambda j, i: (0, j)),       # bias slice
        ]
        out_specs = pl.BlockSpec((tb, tn), lambda j, i: (i, j))
        dims = ("parallel", "parallel")

    # ---- explicit VMEM budget (covers v5e 16 MiB / v6e-v7x 32 MiB defaults,
    # stays within v7x's 64 MiB physical) ------------------------------------
    footprint = 2 * (2 * tb * d * a_bytes          # info + mem (double-buffered)
                     + 2 * d * tn * w_bytes        # weight tile
                     + tn * bias.dtype.itemsize    # bias tile
                     + tb * tn * a_bytes)          # output tile
    vmem_limit = int(min(64 << 20,
                         max(16 << 20, footprint * 5 // 4 + (2 << 20))))

    return pl.pallas_call(
        write_unit_kernel,
        out_shape=jax.ShapeDtypeStruct((B, d), information.dtype),
        grid=grid,
        in_specs=in_specs,
        out_specs=out_specs,
        compiler_params=pltpu.CompilerParams(
            dimension_semantics=dims,
            vmem_limit_bytes=vmem_limit),
    )(information, memory, wt, b2)


def init_write_unit_params(key, d, dtype=jnp.float32):
    """Matches the PyTorch module: xavier_uniform_ on W [d, 2d], zero bias.

    Returns (weight [d,2d] f32, wt [2d,d] in `dtype`, bias [d] f32).  The
    weight is transposed (and optionally down-cast to bf16) ONCE here so the
    forward path never pays a per-call transpose/cast.
    """
    fan_in, fan_out = 2 * d, d
    bound = (6.0 / (fan_in + fan_out)) ** 0.5
    weight = jax.random.uniform(key, (d, 2 * d), dtype=jnp.float32,
                                minval=-bound, maxval=bound)
    bias = jnp.zeros((d,), dtype=jnp.float32)
    wt = jnp.asarray(weight.T, dtype=dtype)
    return weight, wt, bias


if __name__ == "__main__":
    # Small but lane-dense shapes (d = 128 fills the 128-wide lane axis).
    B, d = 16, 128
    key = jax.random.PRNGKey(0)
    k_info, k_mem, k_w = jax.random.split(key, 3)

    information = jax.random.normal(k_info, (B, d), dtype=jnp.float32)
    memory = jax.random.normal(k_mem, (B, d), dtype=jnp.float32)
    weight, wt, bias = init_write_unit_params(k_w, d, dtype=jnp.float32)

    # Reference (plain JAX, mirrors the PyTorch forward exactly).
    ref = jnp.concatenate([information, memory], axis=1) @ weight.T + bias

    # f32 path — bitwise-comparable to the reference.
    out = write_unit_forward(information, memory, wt, bias)
    out = jax.block_until_ready(out)
    assert out.shape == (B, d)
    assert jnp.allclose(out, ref, atol=1e-5, rtol=1e-5)

    # bf16 path — halves the dominant HBM stream for the memory-bound regime;
    # f32 accumulation kept in-kernel, so only input/output rounding differs.
    out_bf16 = write_unit_forward(information.astype(jnp.bfloat16),
                                  memory.astype(jnp.bfloat16),
                                  wt.astype(jnp.bfloat16), bias)
    out_bf16 = jax.block_until_ready(out_bf16)
    assert jnp.allclose(out_bf16.astype(jnp.float32), ref, atol=1e-1, rtol=5e-2)

    print("KERNEL_OK")
</pallas_src>

<mosaic_0001>
module attributes {stable_mosaic.version = 11 : i64} {
  func.func @write_unit_kernel(%arg0: i32, %arg1: memref<16x128xf32, #tpu.memory_space<vmem>>, %arg2: memref<16x128xf32, #tpu.memory_space<vmem>>, %arg3: memref<256x128xf32, #tpu.memory_space<vmem>>, %arg4: memref<1x128xf32, #tpu.memory_space<vmem>>, %arg5: memref<16x128xf32, #tpu.memory_space<vmem>>) attributes {dimension_semantics = [#tpu.dimension_semantics<parallel>], iteration_bounds = array<i64: 1>, scalar_prefetch = 0 : i64, scratch_operands = 0 : i64, tpu.core_type = #tpu.core_type<tc>, window_params = [{transform_indices = @transform_0, window_bounds = array<i64: 16, 128>}, {transform_indices = @transform_1, window_bounds = array<i64: 16, 128>}, {pipeline_mode = #tpu.pipeline_mode<synchronous>, transform_indices = @transform_2, window_bounds = array<i64: 256, 128>}, {pipeline_mode = #tpu.pipeline_mode<synchronous>, transform_indices = @transform_3, window_bounds = array<i64: 1, 128>}, {transform_indices = @transform_4, window_bounds = array<i64: 16, 128>}]} {
    %c0 = arith.constant 0 : index
    %c0_0 = arith.constant 0 : index
    %0 = vector.load %arg1[%c0, %c0_0] : memref<16x128xf32, #tpu.memory_space<vmem>>, vector<16x128xf32>
    %c0_1 = arith.constant 0 : index
    %c0_2 = arith.constant 0 : index
    %1 = vector.load %arg3[%c0_1, %c0_2] : memref<256x128xf32, #tpu.memory_space<vmem>>, vector<128x128xf32>
    %cst = arith.constant dense<0.000000e+00> : vector<16x128xf32>
    %2 = tpu.matmul %0, %1, %cst {dimension_numbers = #tpu.dot_dimension_numbers<[1], [0], [0], [1], [0, 0, 1, 1], [], []>} : vector<16x128xf32>, vector<128x128xf32>, vector<16x128xf32> -> vector<16x128xf32>
    %c0_3 = arith.constant 0 : index
    %c0_4 = arith.constant 0 : index
    %3 = vector.load %arg2[%c0_3, %c0_4] : memref<16x128xf32, #tpu.memory_space<vmem>>, vector<16x128xf32>
    %c128 = arith.constant 128 : index
    %c0_5 = arith.constant 0 : index
    %4 = vector.load %arg3[%c128, %c0_5] : memref<256x128xf32, #tpu.memory_space<vmem>>, vector<128x128xf32>
    %cst_6 = arith.constant dense<0.000000e+00> : vector<16x128xf32>
    %5 = tpu.matmul %3, %4, %cst_6 {dimension_numbers = #tpu.dot_dimension_numbers<[1], [0], [0], [1], [0, 0, 1, 1], [], []>} : vector<16x128xf32>, vector<128x128xf32>, vector<16x128xf32> -> vector<16x128xf32>
    %6 = arith.addf %2, %5 : vector<16x128xf32>
    %c0_7 = arith.constant 0 : index
    %c0_8 = arith.constant 0 : index
    %7 = vector.load %arg4[%c0_7, %c0_8] : memref<1x128xf32, #tpu.memory_space<vmem>>, vector<1x128xf32>
    %8 = vector.broadcast %7 : vector<1x128xf32> to vector<16x128xf32>
    %9 = arith.addf %6, %8 : vector<16x128xf32>
    %c0_9 = arith.constant 0 : index
    %c0_10 = arith.constant 0 : index
    %10 = vector.load %arg5[%c0_9, %c0_10] : memref<16x128xf32, #tpu.memory_space<vmem>>, vector<16x128xf32>
    tpu.vector_store %arg5[%c0_9, %c0_10], %9 {strides = array<i32>} : memref<16x128xf32, #tpu.memory_space<vmem>>, vector<16x128xf32>,
    return
  }
  func.func @transform_0(%arg0: i32) -> (i32, i32) {
    %c0_i32 = arith.constant 0 : i32
    %c0_i32_0 = arith.constant 0 : i32
    return %arg0, %c0_i32 : i32, i32
  }
  func.func @transform_1(%arg0: i32) -> (i32, i32) {
    %c0_i32 = arith.constant 0 : i32
    %c0_i32_0 = arith.constant 0 : i32
    return %arg0, %c0_i32 : i32, i32
  }
  func.func @transform_2(%arg0: i32) -> (i32, i32) {
    %c0_i32 = arith.constant 0 : i32
    %c0_i32_0 = arith.constant 0 : i32
    %c0_i32_1 = arith.constant 0 : i32
    return %c0_i32, %c0_i32_0 : i32, i32
  }
  func.func @transform_3(%arg0: i32) -> (i32, i32) {
    %c0_i32 = arith.constant 0 : i32
    %c0_i32_0 = arith.constant 0 : i32
    %c0_i32_1 = arith.constant 0 : i32
    return %c0_i32, %c0_i32_0 : i32, i32
  }
  func.func @transform_4(%arg0: i32) -> (i32, i32) {
    %c0_i32 = arith.constant 0 : i32
    %c0_i32_0 = arith.constant 0 : i32
    return %arg0, %c0_i32 : i32, i32
  }
}

</mosaic_0001>

<bundles_post_ra>
// kernel: tpu_custom_call.1
= control target key start
LH: loop header
LB: loop body
LE: loop exit
PB: predicated region body
PF: predicated region fallthrough
CT: control target
= control target key end

     0   :  { %9 = vsyncpa [#allocation3], 0  ;;  %s374_s0 = inlined_call_operand.hbm [shape: f32[16,128], index: 0, kind: input, shape index: {}]   ;;  %s375_s1 = inlined_call_operand.hbm [shape: f32[16,128], index: 1, kind: input, shape index: {}]   ;;  %s376_s2 = inlined_call_operand.hbm [shape: f32[256,128], index: 2, kind: input, shape index: {}]   ;;  %s377_s3 = inlined_call_operand.vmem [shape: f32[1,128], index: 3, kind: input, shape index: {}]   ;;  %s378_s4 = inlined_call_operand.hbm [shape: f32[16,128], index: 4, kind: output, shape index: {}]  }
   0x1   :  { %10 = vsyncpa [#allocation6], 0 }
   0x2   :  { %11 = vsyncpa [#allocation4], 0  ;;  %s29_s17 = sshll.u32 %s375_s1, 4  ;;  %s316_s18 = smov [#allocation5]   ;;  %s30_s17 = int_to_ptr.hbm [resolvable:$true] %s29_s17 }
   0x3   :  { %s31_s19 = sshll.u32 %s316_s18, 4  ;;  %s16_s22 = sshll.u32 %s374_s0, 4  ;;  %s32_s19 = int_to_ptr.vmem [resolvable:$true] %s31_s19  ;;  %s17_s22 = int_to_ptr.hbm [resolvable:$true] %s16_s22 }
   0x4   :  { %s317_s23 = smov 128   ;;  %s318_s24 = smov 8  }
   0x5   :  { %37 = dma.hbm_to_vmem [thread:$0]  %s30_s17, 256, %s32_s19, [#allocation6], %s317_s23, %s317_s23, %s318_s24  }
   0x6   :  { %s319_s25 = smov [#allocation2]   ;;  %s42_s1 = sshll.u32 %s376_s2, 4  ;;  %s43_s1 = int_to_ptr.hbm [resolvable:$true] %s42_s1 }
   0x7   :  { %s18_s26 = sshll.u32 %s319_s25, 4  ;;  %s320_s0 = smov [#allocation7]   ;;  %s19_s26 = int_to_ptr.vmem [resolvable:$true] %s18_s26 }
   0x8   :  { %24 = dma.hbm_to_vmem [thread:$0]  %s17_s22, 256, %s19_s26, [#allocation3], %s317_s23, %s317_s23, %s318_s24  }
   0x9   :  { %s44_s29 = sshll.u32 %s320_s0, 4  ;;  %s45_s29 = int_to_ptr.vmem [resolvable:$true] %s44_s29 }
   0xa   :  { %50 = dma.hbm_to_vmem [thread:$0]  %s43_s1, 4096, %s45_s29, [#allocation6], %s317_s23, %s317_s23, %s318_s24  }
   0xb   :  { %310 = dma.done.wait [#allocation3], 256  }
   0xc   :  { %311 = vsyncadd [#allocation3], 4294967040 }
   0xd   :  { %312 = dma.done.wait [#allocation6], 4352  }
   0xe   :  { %313 = vsyncadd [#allocation6], 4294962944  ;;  %v100_v0 = vld [vmem:[#allocation7 + $0xf8] sm:$0xff]  ;;  %v99_v2 = vld [vmem:[#allocation7 + $0xf0] sm:$0xff]  ;;  %s321_s5 = smov [#allocation8]   ;;  %s161_s9 = sshll.u32 %s378_s4, 4  ;;  %s162_s9 = int_to_ptr.hbm [resolvable:$true] %s161_s9 }
   0xf   :  { %v82_v1 = vld [vmem:[#allocation7 + $0x78] sm:$0xff]  ;;  %175 = vmatpush.msra.mxu2 %v100_v0  ;;  %v81_v3 = vld [vmem:[#allocation7 + $0x70] sm:$0xff]  ;;  %v98_v4 = vld [vmem:[#allocation7 + $0xe8] sm:$0xff]  ;;  %101 = vmatpush.msra.mxu0 %v100_v0  ;;  %s159_s6 = sshll.u32 %s321_s5, 4  ;;  %s160_s6 = int_to_ptr.vmem [resolvable:$true] %s159_s6 }
  0x10   :  { %191 = vmatpush.msra.mxu3 %v82_v1  ;;  %v80_v5 = vld [vmem:[#allocation7 + $0x68] sm:$0xff]  ;;  %124 = vmatpush.msra.mxu1 %v82_v1  ;;  %v97_v6 = vld [vmem:[#allocation7 + $0xe0] sm:$0xff]  ;;  %v96_v8 = vld [vmem:[#allocation7 + $0xd8] sm:$0xff] }
  0x11   :  { %176 = vmatpush.msra.mxu2 %v99_v2  ;;  %v79_v7 = vld [vmem:[#allocation7 + $0x60] sm:$0xff]  ;;  %102 = vmatpush.msra.mxu0 %v99_v2  ;;  %v78_v9 = vld [vmem:[#allocation7 + $0x58] sm:$0xff]  ;;  %v95_v10 = vld [vmem:[#allocation7 + $0xd0] sm:$0xff] }
  0x12   :  { %192 = vmatpush.msra.mxu3 %v81_v3  ;;  %125 = vmatpush.msra.mxu1 %v81_v3  ;;  %v77_v11 = vld [vmem:[#allocation7 + $0x50] sm:$0xff]  ;;  %v94_v12 = vld [vmem:[#allocation7 + $0xc8] sm:$0xff]  ;;  %v93_v14 = vld [vmem:[#allocation7 + $0xc0] sm:$0xff] }
  0x13   :  { %177 = vmatpush.msra.mxu2 %v98_v4  ;;  %103 = vmatpush.msra.mxu0 %v98_v4  ;;  %v76_v13 = vld [vmem:[#allocation7 + $0x48] sm:$0xff]  ;;  %v75_v15 = vld [vmem:[#allocation7 + $0x40] sm:$0xff]  ;;  %v92_v16 = vld [vmem:[#allocation7 + $0xb8] sm:$0xff] }
  0x14   :  { %193 = vmatpush.msra.mxu3 %v80_v5  ;;  %126 = vmatpush.msra.mxu1 %v80_v5  ;;  %v74_v17 = vld [vmem:[#allocation7 + $0x38] sm:$0xff]  ;;  %v91_v18 = vld [vmem:[#allocation7 + $0xb0] sm:$0xff]  ;;  %v90_v20 = vld [vmem:[#allocation7 + $0xa8] sm:$0xff] }
  0x15   :  { %178 = vmatpush.msra.mxu2 %v97_v6  ;;  %104 = vmatpush.msra.mxu0 %v97_v6  ;;  %v73_v19 = vld [vmem:[#allocation7 + $0x30] sm:$0xff]  ;;  %v72_v21 = vld [vmem:[#allocation7 + $0x28] sm:$0xff]  ;;  %v89_v22 = vld [vmem:[#allocation7 + $0xa0] sm:$0xff] }
  0x16   :  { %194 = vmatpush.msra.mxu3 %v79_v7  ;;  %127 = vmatpush.msra.mxu1 %v79_v7  ;;  %v71_v23 = vld [vmem:[#allocation7 + $0x20] sm:$0xff]  ;;  %v88_v24 = vld [vmem:[#allocation7 + $0x98] sm:$0xff]  ;;  %v87_v26 = vld [vmem:[#allocation7 + $0x90] sm:$0xff] }
  0x17   :  { %179 = vmatpush.msra.mxu2 %v96_v8  ;;  %105 = vmatpush.msra.mxu0 %v96_v8  ;;  %v70_v25 = vld [vmem:[#allocation7 + $0x18] sm:$0xff]  ;;  %v69_v27 = vld [vmem:[#allocation7 + $0x10] sm:$0xff]  ;;  %v86_v28 = vld [vmem:[#allocation7 + $0x88] sm:$0xff] }
  0x18   :  { %195 = vmatpush.msra.mxu3 %v78_v9  ;;  %128 = vmatpush.msra.mxu1 %v78_v9  ;;  %v68_v29 = vld [vmem:[#allocation7 + $0x8] sm:$0xff]  ;;  %v85_v30 = vld [vmem:[#allocation7 + $0x80] sm:$0xff]  ;;  %v84_v32 = vld [vmem:[#allocation5 + $0x8] sm:$0xff] }
  0x19   :  { %180 = vmatpush.msra.mxu2 %v95_v10  ;;  %106 = vmatpush.msra.mxu0 %v95_v10  ;;  %v67_v31 = vld [vmem:[#allocation7] sm:$0xff]  ;;  %v66_v33 = vld [vmem:[#allocation2 + $0x8] sm:$0xff]  ;;  %v83_v34 = vld [vmem:[#allocation5] sm:$0xff] }
  0x1a   :  { %196 = vmatpush.msra.mxu3 %v77_v11  ;;  %129 = vmatpush.msra.mxu1 %v77_v11  ;;  %v65_v35 = vld [vmem:[#allocation2] sm:$0xff] }
  0x1b   :  { %181 = vmatpush.msra.mxu2 %v94_v12  ;;  %107 = vmatpush.msra.mxu0 %v94_v12  ;;  %v213_v36 = vld [vmem:[%s377_s3] ss:$0 sm:$0xff] }
  0x1c   :  { %197 = vmatpush.msra.mxu3 %v76_v13  ;;  %130 = vmatpush.msra.mxu1 %v76_v13 }
  0x1d   :  { %182 = vmatpush.msra.mxu2 %v93_v14  ;;  %108 = vmatpush.msra.mxu0 %v93_v14 }
  0x1e   :  { %198 = vmatpush.msra.mxu3 %v75_v15  ;;  %131 = vmatpush.msra.mxu1 %v75_v15 }
  0x1f   :  { %183 = vmatpush.msra.mxu2 %v92_v16  ;;  %109 = vmatpush.msra.mxu0 %v92_v16 }
  0x20   :  { %199 = vmatpush.msra.mxu3 %v74_v17  ;;  %132 = vmatpush.msra.mxu1 %v74_v17 }
  0x21   :  { %184 = vmatpush.msra.mxu2 %v91_v18  ;;  %110 = vmatpush.msra.mxu0 %v91_v18 }
  0x22   :  { %200 = vmatpush.msra.mxu3 %v73_v19  ;;  %133 = vmatpush.msra.mxu1 %v73_v19 }
  0x23   :  { %185 = vmatpush.msra.mxu2 %v90_v20  ;;  %111 = vmatpush.msra.mxu0 %v90_v20 }
  0x24   :  { %201 = vmatpush.msra.mxu3 %v72_v21  ;;  %134 = vmatpush.msra.mxu1 %v72_v21 }
  0x25   :  { %186 = vmatpush.msra.mxu2 %v89_v22  ;;  %112 = vmatpush.msra.mxu0 %v89_v22 }
  0x26   :  { %202 = vmatpush.msra.mxu3 %v71_v23  ;;  %135 = vmatpush.msra.mxu1 %v71_v23 }
  0x27   :  { %187 = vmatpush.msra.mxu2 %v88_v24  ;;  %113 = vmatpush.msra.mxu0 %v88_v24 }
  0x28   :  { %203 = vmatpush.msra.mxu3 %v70_v25  ;;  %136 = vmatpush.msra.mxu1 %v70_v25 }
  0x29   :  { %188 = vmatpush.msra.mxu2 %v87_v26  ;;  %114 = vmatpush.msra.mxu0 %v87_v26 }
  0x2a   :  { %204 = vmatpush.msra.mxu3 %v69_v27  ;;  %137 = vmatpush.msra.mxu1 %v69_v27 }
  0x2b   :  { %189 = vmatpush.msra.mxu2 %v86_v28  ;;  %115 = vmatpush.msra.mxu0 %v86_v28 }
  0x2c   :  { %205 = vmatpush.msra.mxu3 %v68_v29  ;;  %138 = vmatpush.msra.mxu1 %v68_v29 }
  0x2d   :  { %190 = vmatpush.msra.mxu2 %v85_v30  ;;  %116 = vmatpush.msra.mxu0 %v85_v30 }
  0x2e   :  { %206 = vmatpush.msra.mxu3 %v67_v31  ;;  %120 = vmatmul.f32.vlgmr.msra.gmra.mxu2 %v84_v32 }
  0x2f   :  { %143 = vmatmul.f32.vlgmr.msra.gmra.mxu3 %v66_v33  ;;  %139 = vmatpush.msra.mxu1 %v67_v31 }
  0x30   :  { %117 = vmatmul.f32.vlgmr.msra.gmra.mxu0 %v83_v34  ;;  %140 = vmatmul.f32.vlgmr.msra.gmra.mxu1 %v65_v35 }
  0xad   :  { %v118_v37 = vpop.f32.mrf.mxu0  ;;  %v141_v38 = vpop.f32.mrf.mxu1 }
  0xae   :  { %v142_v39 = vadd.f32 %v141_v38, %v118_v37 }
  0xb0   :  { %v151_v40 = vadd.f32 %v213_v36, %v142_v39 }
  0xb1   :  { %v121_v41 = vpop.f32.mrf.mxu2 }
  0xb2   :  { %v144_v42 = vpop.f32.mrf.mxu3  ;;  %153 = vst [vmem:[#allocation8] sm:$0xff] %v151_v40 }
  0xb3   :  { %v145_v43 = vadd.f32 %v144_v42, %v121_v41 }
  0xb5   :  { %v152_v44 = vadd.f32 %v213_v36, %v145_v43 }
  0xb7   :  { %154 = vst [vmem:[#allocation8 + $0x8] sm:$0xff] %v152_v44 }
  0xb8   :  { %167 = dma.vmem_to_hbm [thread:$0]  %s160_s6, 256, %s162_s9, [#allocation4], %s317_s23, %s317_s23, %s318_s24  }
  0xb9   :  { %314 = dma.done.wait [#allocation4], 256  }
  0xba   :  { %315 = vsyncadd [#allocation4], 4294967040 }
  0xbb   :  { %172 = vsyncpa [#allocation3], 1 }
  0xbc   :  { %173 = vsyncpa [#allocation6], 1 }
  0xbd   :  { %174 = vsyncpa [#allocation4], 1 }

</bundles_post_ra>
